<compile_context>
chip_gen: v7x
topology: tpu7x:2x2x1
jax: 0.10.0
libtpu: 0.0.40
codegen_flags: <defaults>
</compile_context>

<pallas_src>
import jax
import jax.numpy as jnp
from jax.experimental import pallas as pl
from jax.experimental.pallas import tpu as pltpu

LANES = 128
SUBLANES = 8


def _calibrator_kernel(ab_ref, x_ref, o_ref):
    # ab_ref: SMEM (2,) float32 -> [a, b]
    # x_ref / o_ref: VMEM tiles (block_rows, lane_width)
    a = ab_ref[0]
    b = ab_ref[1]
    x = x_ref[...].astype(jnp.float32)
    o_ref[...] = (a * x + b).astype(o_ref.dtype)


def _round_up(n, m):
    return ((n + m - 1) // m) * m


def _physical_vmem_bytes():
    """Generation-aware VMEM capacity (falls back to the smallest, v7x)."""
    try:
        info = pltpu.get_tpu_info()
        cap = getattr(info, "vmem_capacity_bytes", None)
        if cap:
            return int(cap)
    except Exception:
        pass
    return 64 << 20  # conservative: v7x physical VMEM


def calibrator_forward(x, a, b, *,
                       target_tile_bytes=4 << 20,
                       small_input_bytes=256 << 10,
                       force_kernel=False):
    """y = a * x + b elementwise, any shape, float dtypes.

    target_tile_bytes: per-tile size (~4 MiB). 2 in + 2 out double-buffered
        tiles (=16 MiB) stay under every generation's VMEM once
        vmem_limit_bytes is raised explicitly.
    small_input_bytes: below this, plain XLA is already at roofline -> skip
        the pallas_call entirely (unless force_kernel=True).
    """
    orig_shape = x.shape
    orig_dtype = x.dtype
    total = x.size
    itemsize = jnp.dtype(orig_dtype).itemsize

    a32 = jnp.float32(a)
    b32 = jnp.float32(b)

    def _jax_affine(v):
        return (a32 * v.astype(jnp.float32) + b32).astype(orig_dtype)

    if total == 0:
        return x

    # Pick the widest lane width in {512, 256, 128} that divides the element
    # count; this makes the reshape free and removes any remainder handling.
    lane_width = None
    for lw in (4 * LANES, 2 * LANES, LANES):
        if total % lw == 0:
            lane_width = lw
            break
    divisible = lane_width is not None
    if lane_width is None:
        lane_width = 4 * LANES

    # Small-input fast path (or too small to form even one lane-dense row).
    if (not force_kernel and total * itemsize < small_input_bytes) \
            or total < lane_width:
        return _jax_affine(x)

    x_flat = x.reshape(-1)                 # contiguous flatten: free
    rows = total // lane_width             # full lane-dense rows -> kernel
    main = rows * lane_width
    x_main = x_flat[:main].reshape(rows, lane_width) if not divisible \
        else x_flat.reshape(rows, lane_width)

    # Tile sizing: ~target_tile_bytes, multiple of 8 sublanes; if a single
    # block covers everything use the exact row count (block == full dim is
    # always a legal block shape, no ragged handling needed).
    bytes_per_row = lane_width * itemsize
    block_rows = max(SUBLANES,
                     (target_tile_bytes // bytes_per_row) // SUBLANES * SUBLANES)
    block_rows = min(block_rows, _round_up(rows, SUBLANES))
    if rows <= block_rows:
        block_rows = rows

    grid = (pl.cdiv(rows, block_rows),)
    tile_bytes = block_rows * lane_width * itemsize

    # 2 input + 2 output double-buffered tiles + headroom, capped by a
    # generation-aware ceiling (3/4 of physical VMEM; v7x = 48 MiB).
    vmem_cap = _physical_vmem_bytes()
    vmem_limit = max(4 * tile_bytes + (8 << 20), 16 << 20)
    vmem_limit = min(vmem_limit, max(16 << 20, (vmem_cap * 3) // 4))

    ab = jnp.asarray([a, b], dtype=jnp.float32)

    y_main = pl.pallas_call(
        _calibrator_kernel,
        out_shape=jax.ShapeDtypeStruct((rows, lane_width), orig_dtype),
        grid=grid,
        in_specs=[
            pl.BlockSpec(memory_space=pltpu.SMEM),                     # [a, b]
            pl.BlockSpec((block_rows, lane_width), lambda i: (i, 0)),  # x tile
        ],
        out_specs=pl.BlockSpec((block_rows, lane_width), lambda i: (i, 0)),
        compiler_params=pltpu.CompilerParams(
            dimension_semantics=("parallel",),
            vmem_limit_bytes=int(vmem_limit),
        ),
    )(ab, x_main)

    if divisible:
        return y_main.reshape(orig_shape)

    # Rare path: element count not a multiple of 128 -> tiny pure-JAX tail
    # (< lane_width elements) stitched back on.
    y_tail = _jax_affine(x_flat[main:])
    return jnp.concatenate([y_main.reshape(-1), y_tail]).reshape(orig_shape)


if __name__ == "__main__":
    key = jax.random.PRNGKey(0)
    # Calibrator params (deterministic, synthetic — __init__ takes scalars a, b)
    a = 1.7
    b = -0.3

    # Small score-like tensor; forced through the Pallas kernel.
    x = jax.random.normal(key, (2, 4, 16, 16), dtype=jnp.float32)
    y = calibrator_forward(x, a, b, force_kernel=True)
    jax.block_until_ready(y)
    y_ref = jnp.float32(a) * x + jnp.float32(b)
    assert y.shape == x.shape and y.dtype == x.dtype
    assert jnp.allclose(y, y_ref, atol=1e-6, rtol=1e-6)

    # Default path on the same input (small-input fast path).
    y_fast = calibrator_forward(x, a, b)
    jax.block_until_ready(y_fast)
    assert jnp.allclose(y_fast, y_ref, atol=1e-6, rtol=1e-6)

    # Larger shape whose size is NOT a multiple of 128: kernel + JAX tail path.
    x2 = jax.random.normal(jax.random.PRNGKey(1), (3, 7, 64, 67), dtype=jnp.float32)
    y2 = calibrator_forward(x2, a, b)
    jax.block_until_ready(y2)
    assert jnp.allclose(y2, jnp.float32(a) * x2 + jnp.float32(b),
                        atol=1e-6, rtol=1e-6)

    # bf16 divisible shape through the kernel path.
    x3 = jax.random.normal(jax.random.PRNGKey(2), (4, 8, 64, 96), dtype=jnp.bfloat16)
    y3 = calibrator_forward(x3, a, b)
    jax.block_until_ready(y3)
    y3_ref = (jnp.float32(a) * x3.astype(jnp.float32) + jnp.float32(b)
              ).astype(jnp.bfloat16)
    assert y3.shape == x3.shape and y3.dtype == x3.dtype
    assert jnp.allclose(y3.astype(jnp.float32), y3_ref.astype(jnp.float32),
                        atol=2e-2, rtol=2e-2)

    print("KERNEL_OK")
</pallas_src>

<mosaic_0001>
module attributes {stable_mosaic.version = 11 : i64} {
  func.func @_calibrator_kernel(%arg0: i32, %arg1: memref<2xf32, #tpu.memory_space<smem>>, %arg2: memref<4x512xf32, #tpu.memory_space<vmem>>, %arg3: memref<4x512xf32, #tpu.memory_space<vmem>>) attributes {dimension_semantics = [#tpu.dimension_semantics<parallel>], iteration_bounds = array<i64: 1>, scalar_prefetch = 0 : i64, scratch_operands = 0 : i64, tpu.core_type = #tpu.core_type<tc>, window_params = [{transform_indices = @transform_0, window_bounds = array<i64: 2>}, {transform_indices = @transform_1, window_bounds = array<i64: 4, 512>}, {transform_indices = @transform_2, window_bounds = array<i64: 4, 512>}]} {
    %c0 = arith.constant 0 : index
    %0 = memref.load %arg1[%c0] : memref<2xf32, #tpu.memory_space<smem>>
    %c1 = arith.constant 1 : index
    %1 = memref.load %arg1[%c1] : memref<2xf32, #tpu.memory_space<smem>>
    %c0_0 = arith.constant 0 : index
    %c0_1 = arith.constant 0 : index
    %2 = vector.load %arg2[%c0_0, %c0_1] : memref<4x512xf32, #tpu.memory_space<vmem>>, vector<4x512xf32>
    %3 = vector.broadcast %0 : f32 to vector<4x512xf32>
    %4 = arith.mulf %3, %2 : vector<4x512xf32>
    %5 = vector.broadcast %1 : f32 to vector<4x512xf32>
    %6 = arith.addf %4, %5 : vector<4x512xf32>
    %c0_2 = arith.constant 0 : index
    %c0_3 = arith.constant 0 : index
    %7 = vector.load %arg3[%c0_2, %c0_3] : memref<4x512xf32, #tpu.memory_space<vmem>>, vector<4x512xf32>
    tpu.vector_store %arg3[%c0_2, %c0_3], %6 {strides = array<i32>} : memref<4x512xf32, #tpu.memory_space<vmem>>, vector<4x512xf32>,
    return
  }
  func.func @transform_0(%arg0: i32) -> i32 {
    %c0_i32 = arith.constant 0 : i32
    %c0_i32_0 = arith.constant 0 : i32
    return %c0_i32 : i32
  }
  func.func @transform_1(%arg0: i32) -> (i32, i32) {
    %c0_i32 = arith.constant 0 : i32
    %c0_i32_0 = arith.constant 0 : i32
    return %arg0, %c0_i32 : i32, i32
  }
  func.func @transform_2(%arg0: i32) -> (i32, i32) {
    %c0_i32 = arith.constant 0 : i32
    %c0_i32_0 = arith.constant 0 : i32
    return %arg0, %c0_i32 : i32, i32
  }
}

</mosaic_0001>

<bundles_post_ra>
// kernel: tpu_custom_call.1
= control target key start
LH: loop header
LB: loop body
LE: loop exit
PB: predicated region body
PF: predicated region fallthrough
CT: control target
= control target key end

     0   :  { %7 = vsyncpa [#allocation5], 0  ;;  %s181_s0 = inlined_call_operand.hbm [shape: f32[2], index: 0, kind: input, shape index: {}]   ;;  %s182_s1 = inlined_call_operand.hbm [shape: f32[4,512], index: 1, kind: input, shape index: {}]   ;;  %s183_s2 = inlined_call_operand.hbm [shape: f32[4,512], index: 2, kind: output, shape index: {}]  }
   0x1   :  { %8 = vsyncpa [#allocation3], 0 }
   0x2   :  { %9 = vsyncpa [#allocation4], 0  ;;  %s67_s11 = scalar_lea.hbm %s181_s0, 16 }
   0x3   :  { %p68_p0 = scmp.ne.s32.totalorder %s181_s0, %s67_s11  ;;  %p71_p1 = scmp.lt.u32.totalorder %s67_s11, %s181_s0 }
   0x5   :  { %p73_p2 = pnand %p71_p1, %p68_p0 }
   0x7   :  { %76 = shalt.err (!%p73_p2)
}
   0x8   :  { %s127_s16 = smov [#allocation2]   ;;  %s128_s19 = smov [#allocation6]  }
   0x9   :  { %17 = dma.hbm_to_smem %s181_s0, 16, %s127_s16, [#allocation5]  }
   0xa   :  { %s24_s20 = sshll.u32 %s128_s19, 4  ;;  %s77_s23 = scalar_lea.hbm %s182_s1, 256  ;;  %s25_s20 = int_to_ptr.vmem [resolvable:$true] %s24_s20 }
   0xb   :  { %p78_p3 = scmp.ne.s32.totalorder %s182_s1, %s77_s23  ;;  %p81_p4 = scmp.lt.u32.totalorder %s77_s23, %s182_s1 }
   0xd   :  { %p83_p5 = pnand %p81_p4, %p78_p3 }
   0xf   :  { %86 = shalt.err (!%p83_p5)
}
  0x10   :  { %s87_s28 = scalar_lea.vmem %s25_s20, 256  ;;  %p92_p7 = scmp.lt.s32.totalorder %s25_s20, %s25_s20 }
  0x11   :  { %p88_p6 = scmp.ne.s32.totalorder %s25_s20, %s87_s28  ;;  %p93_p8 = scmp.lt.s32.totalorder %s87_s28, %s87_s28 }
  0x13   :  { %p94_p9 = por %p93_p8, %p92_p7 }
  0x15   :  { %p95_p10 = pnand %p94_p9, %p88_p6 }
  0x17   :  { %98 = shalt.err (!%p95_p10)
}
  0x18   :  { %27 = dma.hbm_to_vmem [thread:$0]  %s182_s1, 256, %s25_s20, [#allocation3]  }
  0x19   :  { %121 = dma.done.wait [#allocation5], 16  }
  0x1a   :  { %122 = vsyncadd [#allocation5], 4294967280 }
  0x1b   :  { %123 = dma.done.wait [#allocation3], 256  }
  0x1c   :  { %124 = vsyncadd [#allocation3], 4294967040 }
  0x1d   :  { %34 = sfence }
  0x1e   :  { %s35_s30 = sld [smem:[#allocation2]]  ;;  %s63_s3 = sld [smem:[#allocation2 + $0x1]]  ;;  %v37_v0 = vld [vmem:[#allocation6] sm:$0xff]  ;;  %v38_v1 = vld [vmem:[#allocation6 + $0x8] sm:$0xff] }
  0x1f   :  { %s129_s4 = smov [#allocation7]  }
  0x20   :  { %s53_s5 = sshll.u32 %s129_s4, 4  ;;  %s54_s5 = int_to_ptr.vmem [resolvable:$true] %s53_s5 }
  0x21   :  { %s99_s1 = scalar_lea.vmem %s54_s5, 256  ;;  %p104_p12 = scmp.lt.s32.totalorder %s54_s5, %s54_s5 }
  0x22   :  { %p100_p11 = scmp.ne.s32.totalorder %s54_s5, %s99_s1  ;;  %p105_p13 = scmp.lt.s32.totalorder %s99_s1, %s99_s1 }
  0x24   :  { %v39_v2 = vstv %s35_s30  ;;  %v42_v3 = vstv %s63_s3  ;;  %p106_p0 = por %p105_p13, %p104_p12 }
  0x25   :  { %v40_v4 = vmul.f32 %v39_v2, %v37_v0  ;;  %v41_v5 = vmul.f32 %v39_v2, %v38_v1 }
  0x26   :  { %p107_p1 = pnand %p106_p0, %p100_p11 }
  0x27   :  { %v43_v6 = vadd.f32 %v42_v3, %v40_v4  ;;  %v44_v7 = vadd.f32 %v42_v3, %v41_v5 }
  0x29   :  { %45 = vst [vmem:[#allocation7] sm:$0xff] %v43_v6  ;;  %46 = vst [vmem:[#allocation7 + $0x8] sm:$0xff] %v44_v7 }
  0x2a   :  { %110 = shalt.err (!%p107_p1)
}
  0x2b   :  { %s111_s8 = scalar_lea.hbm %s183_s2, 256 }
  0x2c   :  { %p112_p2 = scmp.ne.s32.totalorder %s183_s2, %s111_s8  ;;  %p115_p3 = scmp.lt.u32.totalorder %s111_s8, %s183_s2 }
  0x2e   :  { %p117_p4 = pnand %p115_p3, %p112_p2 }
  0x30   :  { %120 = shalt.err (!%p117_p4)
}
  0x31   :  { %56 = dma.vmem_to_hbm [thread:$0]  %s54_s5, 256, %s183_s2, [#allocation4]  }
  0x32   :  { %125 = dma.done.wait [#allocation4], 256  }
  0x33   :  { %126 = vsyncadd [#allocation4], 4294967040 }
  0x34   :  { %60 = vsyncpa [#allocation3], 1 }
  0x35   :  { %61 = vsyncpa [#allocation4], 1 }
  0x36   :  { %62 = vsyncpa [#allocation5], 1 }

</bundles_post_ra>
